<compile_context>
chip_gen: v7x
topology: tpu7x:2x2x1
jax: 0.10.0
libtpu: 0.0.40
codegen_flags: <defaults>
</compile_context>

<pallas_src>
import functools

import jax
import jax.numpy as jnp
from jax import lax
from jax.experimental import pallas as pl
from jax.experimental.pallas import tpu as pltpu

_EPS = 1e-5
_GEMM_DTYPE = jnp.bfloat16


def _compiler_params():
    return pltpu.CompilerParams(
        dimension_semantics=("parallel",),
        vmem_limit_bytes=48 * 1024 * 1024,
    )


# ----------------------------- Pallas kernels ------------------------------ #
def _conv1_id_kernel(mc_ref, xa_ref, xb_ref, xc_ref, w_ref,
                     out_ref, sum_ref, sq_ref, *, shifts, tm):
    """Stride-1 3x3 conv from a 3-block halo window of the centered-padded
    input; output is written in the 'centered' frame convention.  Per-channel
    partial BN stats are taken from the f32 accumulator, masked to valid
    columns, before the bf16 cast."""
    win = jnp.concatenate([xa_ref[...], xb_ref[...], xc_ref[...]],
                          axis=-1).astype(_GEMM_DTYPE)          # (Cin, 3*tm)
    acc = None
    for t, sh in enumerate(shifts):                              # 9 static taps
        part = jnp.dot(w_ref[t], win[:, tm + sh:tm + sh + tm],
                       preferred_element_type=jnp.float32)
        acc = part if acc is None else acc + part
    out_ref[...] = acc.astype(out_ref.dtype)
    m = mc_ref[...]                                              # (1, tm) 0/1
    sum_ref[...] = jnp.sum(acc * m, axis=-1, keepdims=True)
    sq_ref[...] = jnp.sum(acc * acc * m, axis=-1, keepdims=True)


def _conv1_gemm_kernel(p_ref, w_ref, out_ref, sum_ref, sq_ref):
    """Stride-2 conv1 as one big-K GEMM on a bf16 im2col tile + BN partials."""
    acc = jnp.dot(w_ref[...], p_ref[...], preferred_element_type=jnp.float32)
    out_ref[...] = acc.astype(out_ref.dtype)
    sum_ref[...] = jnp.sum(acc, axis=-1, keepdims=True)
    sq_ref[...] = jnp.sum(acc * acc, axis=-1, keepdims=True)


def _bn_relu_window(c1a_ref, c1b_ref, ma_ref, mb_ref, mean, inv):
    """Fused BN1 + ReLU + zero-padding mask on a 2-block halo window of the
    raw conv1 output (the 'h' activation is never written to HBM)."""
    win = jnp.concatenate([c1a_ref[...], c1b_ref[...]],
                          axis=-1).astype(jnp.float32)           # (C, 2*tm)
    msk = jnp.concatenate([ma_ref[...], mb_ref[...]], axis=-1)   # (1, 2*tm)
    return (jnp.maximum((win - mean) * inv, 0.0) * msk).astype(_GEMM_DTYPE)


def _conv2_id_kernel(mtl_ref, ma_ref, mb_ref, c1a_ref, c1b_ref, w_ref,
                     m1_ref, i1_ref, out_ref, sum_ref, sq_ref, *, shifts, tm):
    hwin = _bn_relu_window(c1a_ref, c1b_ref, ma_ref, mb_ref,
                           m1_ref[...], i1_ref[...])
    acc = None
    for t, sh in enumerate(shifts):
        part = jnp.dot(w_ref[t], hwin[:, sh:sh + tm],
                       preferred_element_type=jnp.float32)
        acc = part if acc is None else acc + part
    out_ref[...] = acc.astype(out_ref.dtype)
    m = mtl_ref[...]
    sum_ref[...] = jnp.sum(acc * m, axis=-1, keepdims=True)
    sq_ref[...] = jnp.sum(acc * acc * m, axis=-1, keepdims=True)


def _conv2_down_kernel(mtl_ref, ma_ref, mb_ref, c1a_ref, c1b_ref, w_ref,
                       m1_ref, i1_ref, xs_ref, wd_ref,
                       out_ref, sum_ref, sq_ref, rsum_ref, rsq_ref,
                       *, shifts, tm):
    """conv2 (+fused BN1/ReLU) + shortcut 1x1 GEMM statistics (the shortcut
    result itself is NOT written to HBM; it is recomputed in the final pass)."""
    hwin = _bn_relu_window(c1a_ref, c1b_ref, ma_ref, mb_ref,
                           m1_ref[...], i1_ref[...])
    racc = jnp.dot(wd_ref[...], xs_ref[...], preferred_element_type=jnp.float32)
    acc = None
    for t, sh in enumerate(shifts):
        part = jnp.dot(w_ref[t], hwin[:, sh:sh + tm],
                       preferred_element_type=jnp.float32)
        acc = part if acc is None else acc + part
    out_ref[...] = acc.astype(out_ref.dtype)
    m = mtl_ref[...]
    sum_ref[...] = jnp.sum(acc * m, axis=-1, keepdims=True)
    sq_ref[...] = jnp.sum(acc * acc * m, axis=-1, keepdims=True)
    rsum_ref[...] = jnp.sum(racc * m, axis=-1, keepdims=True)
    rsq_ref[...] = jnp.sum(racc * racc * m, axis=-1, keepdims=True)


def _final_id_kernel(c2_ref, m2_ref, i2_ref, xa_ref, xb_ref, out_ref,
                     *, res_off, tm):
    """out = relu(BN2(c2) + x): the identity residual is sliced straight out of
    the f32 padded-x window (exact, no extra residual buffer)."""
    win = jnp.concatenate([xa_ref[...], xb_ref[...]], axis=-1)
    res = win[:, res_off:res_off + tm]
    out_ref[...] = jnp.maximum(
        (c2_ref[...].astype(jnp.float32) - m2_ref[...]) * i2_ref[...] + res, 0.0)


def _final_down_kernel(c2_ref, m2_ref, i2_ref, xs_ref, wd_ref, mr_ref, ir_ref,
                       out_ref):
    """out = relu(BN2(c2) + BN(conv1x1_s2(x))), shortcut GEMM recomputed."""
    racc = jnp.dot(wd_ref[...], xs_ref[...], preferred_element_type=jnp.float32)
    out_ref[...] = jnp.maximum(
        (c2_ref[...].astype(jnp.float32) - m2_ref[...]) * i2_ref[...]
        + (racc - mr_ref[...]) * ir_ref[...], 0.0)


# ------------------------------ spec helpers -------------------------------- #
def _shifted_tile(c, tm, off):
    def index_map(i):
        return (0, i + off)
    return pl.BlockSpec((c, tm), index_map)


def _full(shape):
    return pl.BlockSpec(shape, lambda i: tuple(0 for _ in shape))


def _stats(c):
    return pl.BlockSpec((None, c, 1), lambda i: (i, 0, 0))


# ------------------------------- JAX glue ----------------------------------- #
def _round_up(n, m):
    return (n + m - 1) // m * m


def _bn_params(sum_parts, sq_parts, count):
    s1 = jnp.sum(sum_parts, axis=0)
    s2 = jnp.sum(sq_parts, axis=0)
    mean = s1 / count
    var = s2 / count - mean * mean
    return mean, lax.rsqrt(var + _EPS)


def _im2col_T(x_nhwc, stride, m_pad):
    """3x3/pad=1 im2col, channel-major transposed (9*C, m_pad); only used for
    the stride-2 conv1 of the downsample path (bf16, built once)."""
    b, h, w, c = x_nhwc.shape
    ho = (h + 2 - 3) // stride + 1
    wo = (w + 2 - 3) // stride + 1
    m = b * ho * wo
    xp = jnp.pad(x_nhwc, ((0, 0), (1, 1), (1, 1), (0, 0)))
    taps = []
    for dy in range(3):
        for dx in range(3):
            sl = xp[:, dy:dy + stride * (ho - 1) + 1:stride,
                       dx:dx + stride * (wo - 1) + 1:stride, :]
            taps.append(sl.reshape(m, c).T)
    p = jnp.concatenate(taps, axis=0)
    if m_pad > m:
        p = jnp.pad(p, ((0, 0), (0, m_pad - m)))
    return p


def _w3x3_to_mat(w):
    o, i, _, _ = w.shape
    return jnp.transpose(w, (0, 2, 3, 1)).reshape(o, 9 * i)


def _w3x3_taps(w):
    # (O, I, 3, 3) -> (9, O, I), tap index t = dy*3 + dx
    return jnp.transpose(w, (2, 3, 0, 1)).reshape(9, w.shape[0], w.shape[1])


@functools.partial(jax.jit, static_argnames=("downsample", "tile_m"))
def down_res_block_pallas(x_nchw, w1, w2, wd, downsample, tile_m=512):
    x = x_nchw.astype(jnp.float32)
    B, Cin, H, W = x.shape
    Cout = w1.shape[0]
    if not downsample and Cin != Cout:
        raise ValueError("identity shortcut requires in_channel == out_channel")
    stride1 = 2 if downsample else 1
    Ho = (H + 2 - 3) // stride1 + 1
    Wo = (W + 2 - 3) // stride1 + 1
    Hp, Wp = Ho + 2, Wo + 2            # conv2 frame (zero-padded h grid)
    Mf = B * Hp * Wp                   # frame length (flat, on the lane axis)
    M = B * Ho * Wo                    # true per-channel element count for BN

    # M-tile: lane-dense, and >= 2*Wp+2 so a 2-block window covers all 9 taps.
    tm = max(min(tile_m, _round_up(Mf, 128)), _round_up(2 * Wp + 2, 128))
    nt2 = pl.cdiv(Mf, tm)              # conv2 / final grid
    L = nt2 * tm                       # c2 / out buffer length
    nt1 = nt2 + 1                      # conv1 frame grid: one spare block so
    Lx = nt1 * tm                      #   conv2's (i, i+1) window stays in c1

    params = _compiler_params()

    # 0/1 validity masks over the frame (keep frame padding out of BN stats)
    f = jnp.arange(Lx, dtype=jnp.int32)
    row = (f // Wp) % Hp
    col = f % Wp
    inb = f < Mf
    mask_c = (inb & (row >= 1) & (row <= Ho)
              & (col >= 1) & (col <= Wo)).astype(jnp.float32)[None, :]      # centered
    mask_tl = (inb & (row < Ho) & (col < Wo)).astype(jnp.float32)[None, :L]  # top-left

    shifts2 = tuple(dy * Wp + dx for dy in range(3) for dx in range(3))
    w2_t = _w3x3_taps(w2).astype(_GEMM_DTYPE)                    # (9, Cout, Cout)

    if not downsample:
        # ---- conv1 (stride 1): 9 tap matmuls from a 3-block halo window ----
        shifts1 = tuple((dy - 1) * Wp + (dx - 1)
                        for dy in range(3) for dx in range(3))
        xp = jnp.pad(x, ((0, 0), (0, 0), (1, 1), (1, 1)))        # centered pad
        xp = jnp.transpose(xp, (1, 0, 2, 3)).reshape(Cin, Mf)
        nbx = nt2 + 3                                            # lead zero blk + halo
        xp = jnp.pad(xp, ((0, 0), (tm, nbx * tm - tm - Mf)))     # (Cin, nbx*tm) f32
        w1_t = _w3x3_taps(w1).astype(_GEMM_DTYPE)

        c1, s1, q1 = pl.pallas_call(
            functools.partial(_conv1_id_kernel, shifts=shifts1, tm=tm),
            grid=(nt1,),
            in_specs=[
                _shifted_tile(1, tm, 0),                         # stats mask
                _shifted_tile(Cin, tm, 0),                       # x_pad block i-1
                _shifted_tile(Cin, tm, 1),                       # x_pad block i
                _shifted_tile(Cin, tm, 2),                       # x_pad block i+1
                _full((9, Cout, Cin)),
            ],
            out_specs=(_shifted_tile(Cout, tm, 0), _stats(Cout), _stats(Cout)),
            out_shape=(
                jax.ShapeDtypeStruct((Cout, Lx), _GEMM_DTYPE),
                jax.ShapeDtypeStruct((nt1, Cout, 1), jnp.float32),
                jax.ShapeDtypeStruct((nt1, Cout, 1), jnp.float32),
            ),
            compiler_params=params,
        )(mask_c, xp, xp, xp, w1_t)
        mean1, inv1 = _bn_params(s1, q1, M)

        # ---- conv2 with BN1+ReLU fused on the raw conv1 output ------------
        c2, s2, q2 = pl.pallas_call(
            functools.partial(_conv2_id_kernel, shifts=shifts2, tm=tm),
            grid=(nt2,),
            in_specs=[
                _shifted_tile(1, tm, 0),                         # stats mask (top-left)
                _shifted_tile(1, tm, 0),                         # h zero-pad mask, blk i
                _shifted_tile(1, tm, 1),                         # h zero-pad mask, blk i+1
                _shifted_tile(Cout, tm, 0),                      # c1 block i
                _shifted_tile(Cout, tm, 1),                      # c1 block i+1
                _full((9, Cout, Cout)),
                _full((Cout, 1)), _full((Cout, 1)),
            ],
            out_specs=(_shifted_tile(Cout, tm, 0), _stats(Cout), _stats(Cout)),
            out_shape=(
                jax.ShapeDtypeStruct((Cout, L), _GEMM_DTYPE),
                jax.ShapeDtypeStruct((nt2, Cout, 1), jnp.float32),
                jax.ShapeDtypeStruct((nt2, Cout, 1), jnp.float32),
            ),
            compiler_params=params,
        )(mask_tl, mask_c, mask_c, c1, c1, w2_t, mean1, inv1)
        mean2, inv2 = _bn_params(s2, q2, M)

        # ---- BN2 + identity residual (exact f32 slice of x_pad) + ReLU -----
        out_t = pl.pallas_call(
            functools.partial(_final_id_kernel, res_off=Wp + 1, tm=tm),
            grid=(nt2,),
            in_specs=[
                _shifted_tile(Cout, tm, 0),                      # c2
                _full((Cout, 1)), _full((Cout, 1)),
                _shifted_tile(Cin, tm, 1),                       # x_pad block i
                _shifted_tile(Cin, tm, 2),                       # x_pad block i+1
            ],
            out_specs=_shifted_tile(Cout, tm, 0),
            out_shape=jax.ShapeDtypeStruct((Cout, L), jnp.float32),
            compiler_params=params,
        )(c2, mean2, inv2, xp, xp)
    else:
        # ---- conv1 (stride 2): big-K GEMM on a bf16-only im2col slab -------
        x_nhwc = jnp.transpose(x, (0, 2, 3, 1))
        tm1 = min(tm, _round_up(M, 128))
        M1p = _round_up(M, tm1)
        nt1d = M1p // tm1
        p1 = _im2col_T(x_nhwc, 2, M1p).astype(_GEMM_DTYPE)       # (9*Cin, M1p)
        w1_m = _w3x3_to_mat(w1).astype(_GEMM_DTYPE)
        c1d, s1, q1 = pl.pallas_call(
            _conv1_gemm_kernel,
            grid=(nt1d,),
            in_specs=[_shifted_tile(9 * Cin, tm1, 0), _full((Cout, 9 * Cin))],
            out_specs=(_shifted_tile(Cout, tm1, 0), _stats(Cout), _stats(Cout)),
            out_shape=(
                jax.ShapeDtypeStruct((Cout, M1p), _GEMM_DTYPE),
                jax.ShapeDtypeStruct((nt1d, Cout, 1), jnp.float32),
                jax.ShapeDtypeStruct((nt1d, Cout, 1), jnp.float32),
            ),
            compiler_params=params,
        )(p1, w1_m)
        mean1, inv1 = _bn_params(s1, q1, M)

        # relayout conv1 output into the centered conv2 frame (bf16, one pad)
        c1f = c1d[:, :M].reshape(Cout, B, Ho, Wo)
        c1f = jnp.pad(c1f, ((0, 0), (0, 0), (1, 1), (1, 1))).reshape(Cout, Mf)
        c1f = jnp.pad(c1f, ((0, 0), (0, Lx - Mf)))

        # 1x1 stride-2 shortcut operand: direct strided slice of x (no im2col)
        xs = x[:, :, ::2, ::2]
        xs = jnp.pad(xs, ((0, 0), (0, 0), (0, Hp - Ho), (0, Wp - Wo)))
        xs = jnp.transpose(xs, (1, 0, 2, 3)).reshape(Cin, Mf)
        xs = jnp.pad(xs, ((0, 0), (0, L - Mf))).astype(_GEMM_DTYPE)   # (Cin, L)
        wd_m = wd.reshape(Cout, Cin).astype(_GEMM_DTYPE)

        # ---- conv2 (+fused BN1/ReLU) + shortcut-GEMM statistics ------------
        c2, s2, q2, rs, rq = pl.pallas_call(
            functools.partial(_conv2_down_kernel, shifts=shifts2, tm=tm),
            grid=(nt2,),
            in_specs=[
                _shifted_tile(1, tm, 0),
                _shifted_tile(1, tm, 0),
                _shifted_tile(1, tm, 1),
                _shifted_tile(Cout, tm, 0),
                _shifted_tile(Cout, tm, 1),
                _full((9, Cout, Cout)),
                _full((Cout, 1)), _full((Cout, 1)),
                _shifted_tile(Cin, tm, 0),                       # shortcut operand
                _full((Cout, Cin)),
            ],
            out_specs=(_shifted_tile(Cout, tm, 0),
                       _stats(Cout), _stats(Cout), _stats(Cout), _stats(Cout)),
            out_shape=(
                jax.ShapeDtypeStruct((Cout, L), _GEMM_DTYPE),
                jax.ShapeDtypeStruct((nt2, Cout, 1), jnp.float32),
                jax.ShapeDtypeStruct((nt2, Cout, 1), jnp.float32),
                jax.ShapeDtypeStruct((nt2, Cout, 1), jnp.float32),
                jax.ShapeDtypeStruct((nt2, Cout, 1), jnp.float32),
            ),
            compiler_params=params,
        )(mask_tl, mask_c, mask_c, c1f, c1f, w2_t, mean1, inv1, xs, wd_m)
        mean2, inv2 = _bn_params(s2, q2, M)
        meanr, invr = _bn_params(rs, rq, M)

        # ---- BN2 + BN(shortcut recomputed in-kernel) + ReLU ----------------
        out_t = pl.pallas_call(
            _final_down_kernel,
            grid=(nt2,),
            in_specs=[
                _shifted_tile(Cout, tm, 0),
                _full((Cout, 1)), _full((Cout, 1)),
                _shifted_tile(Cin, tm, 0),
                _full((Cout, Cin)),
                _full((Cout, 1)), _full((Cout, 1)),
            ],
            out_specs=_shifted_tile(Cout, tm, 0),
            out_shape=jax.ShapeDtypeStruct((Cout, L), jnp.float32),
            compiler_params=params,
        )(c2, mean2, inv2, xs, wd_m, meanr, invr)

    out = out_t[:, :Mf].reshape(Cout, B, Hp, Wp)[:, :, :Ho, :Wo]
    return jnp.transpose(out, (1, 0, 2, 3))                      # NCHW


# --------------------------- pure-JAX reference ------------------------------ #
def _ref_bn(x):
    mu = jnp.mean(x, axis=(0, 2, 3), keepdims=True)
    var = jnp.mean((x - mu) ** 2, axis=(0, 2, 3), keepdims=True)
    return (x - mu) / jnp.sqrt(var + _EPS)


def down_res_block_ref(x, w1, w2, wd, downsample, gemm_dtype=jnp.float32):
    prec = (lax.Precision.HIGHEST if gemm_dtype == jnp.float32
            else lax.Precision.DEFAULT)

    def conv(a, wt, s, p):
        return lax.conv_general_dilated(
            a.astype(gemm_dtype), wt.astype(gemm_dtype),
            window_strides=(s, s), padding=[(p, p), (p, p)],
            dimension_numbers=("NCHW", "OIHW", "NCHW"),
            preferred_element_type=jnp.float32, precision=prec)

    s1 = 2 if downsample else 1
    h = jnp.maximum(_ref_bn(conv(x, w1, s1, 1)), 0.0)
    out = _ref_bn(conv(h, w2, 1, 1))
    residual = _ref_bn(conv(x, wd, 2, 0)) if downsample else x
    return jnp.maximum(out + residual, 0.0)


# ----------------------------------- main ------------------------------------ #
if __name__ == "__main__":
    key = jax.random.PRNGKey(0)
    ks = jax.random.split(key, 8)

    # ---- downsample=True : in=4 -> out=8, 16x16 -> 8x8 ----
    B, Cin, Cout, H, W = 2, 4, 8, 16, 16
    x = jax.random.normal(ks[0], (B, Cin, H, W), jnp.float32)
    w1 = jax.random.normal(ks[1], (Cout, Cin, 3, 3), jnp.float32) * 0.2
    w2 = jax.random.normal(ks[2], (Cout, Cout, 3, 3), jnp.float32) * 0.2
    wd = jax.random.normal(ks[3], (Cout, Cin, 1, 1), jnp.float32) * 0.2

    out_d = down_res_block_pallas(x, w1, w2, wd, downsample=True)
    jax.block_until_ready(out_d)
    assert out_d.shape == (B, Cout, H // 2, W // 2), out_d.shape
    ref_bf = down_res_block_ref(x, w1, w2, wd, True, gemm_dtype=jnp.bfloat16)
    ref_f32 = down_res_block_ref(x, w1, w2, wd, True, gemm_dtype=jnp.float32)
    assert jnp.allclose(out_d, ref_bf, rtol=5e-2, atol=5e-2), \
        float(jnp.max(jnp.abs(out_d - ref_bf)))
    assert jnp.allclose(out_d, ref_f32, rtol=6e-2, atol=6e-2), \
        float(jnp.max(jnp.abs(out_d - ref_f32)))

    # ---- downsample=False : in=out=4, 16x16 -> 16x16 (multi-tile grid) ----
    C = 4
    x2 = jax.random.normal(ks[4], (B, C, H, W), jnp.float32)
    w1b = jax.random.normal(ks[5], (C, C, 3, 3), jnp.float32) * 0.2
    w2b = jax.random.normal(ks[6], (C, C, 3, 3), jnp.float32) * 0.2
    wdb = jax.random.normal(ks[7], (C, C, 1, 1), jnp.float32) * 0.2  # unused

    out_i = down_res_block_pallas(x2, w1b, w2b, wdb, downsample=False)
    jax.block_until_ready(out_i)
    assert out_i.shape == (B, C, H, W), out_i.shape
    ref_bf_i = down_res_block_ref(x2, w1b, w2b, wdb, False, gemm_dtype=jnp.bfloat16)
    ref_f32_i = down_res_block_ref(x2, w1b, w2b, wdb, False, gemm_dtype=jnp.float32)
    assert jnp.allclose(out_i, ref_bf_i, rtol=5e-2, atol=5e-2), \
        float(jnp.max(jnp.abs(out_i - ref_bf_i)))
    assert jnp.allclose(out_i, ref_f32_i, rtol=6e-2, atol=6e-2), \
        float(jnp.max(jnp.abs(out_i - ref_f32_i)))

    print("KERNEL_OK")
</pallas_src>

<mosaic_0001>
module attributes {stable_mosaic.version = 11 : i64} {
  func.func @_conv1_gemm_kernel(%arg0: i32, %arg1: memref<36x128xbf16, #tpu.memory_space<vmem>>, %arg2: memref<8x36xbf16, #tpu.memory_space<vmem>>, %arg3: memref<8x128xbf16, #tpu.memory_space<vmem>>, %arg4: memref<1x8x1xf32, #tpu.memory_space<vmem>>, %arg5: memref<1x8x1xf32, #tpu.memory_space<vmem>>) attributes {dimension_semantics = [#tpu.dimension_semantics<parallel>], iteration_bounds = array<i64: 1>, scalar_prefetch = 0 : i64, scratch_operands = 0 : i64, tpu.core_type = #tpu.core_type<tc>, window_params = [{transform_indices = @transform_0, window_bounds = array<i64: 36, 128>}, {pipeline_mode = #tpu.pipeline_mode<synchronous>, transform_indices = @transform_1, window_bounds = array<i64: 8, 36>}, {transform_indices = @transform_2, window_bounds = array<i64: 8, 128>}, {transform_indices = @transform_3, window_bounds = array<i64: 1, 8, 1>}, {transform_indices = @transform_4, window_bounds = array<i64: 1, 8, 1>}]} {
    %c0 = arith.constant 0 : index
    %c0_0 = arith.constant 0 : index
    %0 = vector.load %arg2[%c0, %c0_0] : memref<8x36xbf16, #tpu.memory_space<vmem>>, vector<8x36xbf16>
    %c0_1 = arith.constant 0 : index
    %c0_2 = arith.constant 0 : index
    %1 = vector.load %arg1[%c0_1, %c0_2] : memref<36x128xbf16, #tpu.memory_space<vmem>>, vector<36x128xbf16>
    %cst = arith.constant dense<0.000000e+00> : vector<8x128xf32>
    %2 = tpu.matmul %0, %1, %cst {dimension_numbers = #tpu.dot_dimension_numbers<[1], [0], [0], [1], [0, 0, 1, 1], [], []>} : vector<8x36xbf16>, vector<36x128xbf16>, vector<8x128xf32> -> vector<8x128xf32>
    %3 = arith.truncf %2 : vector<8x128xf32> to vector<8x128xbf16>
    %c0_3 = arith.constant 0 : index
    %c0_4 = arith.constant 0 : index
    %4 = vector.load %arg3[%c0_3, %c0_4] : memref<8x128xbf16, #tpu.memory_space<vmem>>, vector<8x128xbf16>
    tpu.vector_store %arg3[%c0_3, %c0_4], %3 {strides = array<i32>} : memref<8x128xbf16, #tpu.memory_space<vmem>>, vector<8x128xbf16>,
    %cst_5 = arith.constant dense<0.000000e+00> : vector<8xf32>
    %5 = vector.multi_reduction <add>, %2, %cst_5 [1] : vector<8x128xf32> to vector<8xf32>
    %6 = vector.shape_cast %5 : vector<8xf32> to vector<8x1xf32>
    %c0_6 = arith.constant 0 : index
    %c0_7 = arith.constant 0 : index
    %c0_8 = arith.constant 0 : index
    %7 = vector.load %arg4[%c0_6, %c0_7, %c0_8] : memref<1x8x1xf32, #tpu.memory_space<vmem>>, vector<1x8x1xf32>
    %8 = vector.shape_cast %7 : vector<1x8x1xf32> to vector<8x1xf32>
    %9 = vector.shape_cast %6 : vector<8x1xf32> to vector<1x8x1xf32>
    tpu.vector_store %arg4[%c0_6, %c0_7, %c0_8], %9 {strides = array<i32>} : memref<1x8x1xf32, #tpu.memory_space<vmem>>, vector<1x8x1xf32>,
    %10 = arith.mulf %2, %2 : vector<8x128xf32>
    %cst_9 = arith.constant dense<0.000000e+00> : vector<8xf32>
    %11 = vector.multi_reduction <add>, %10, %cst_9 [1] : vector<8x128xf32> to vector<8xf32>
    %12 = vector.shape_cast %11 : vector<8xf32> to vector<8x1xf32>
    %c0_10 = arith.constant 0 : index
    %c0_11 = arith.constant 0 : index
    %c0_12 = arith.constant 0 : index
    %13 = vector.load %arg5[%c0_10, %c0_11, %c0_12] : memref<1x8x1xf32, #tpu.memory_space<vmem>>, vector<1x8x1xf32>
    %14 = vector.shape_cast %13 : vector<1x8x1xf32> to vector<8x1xf32>
    %15 = vector.shape_cast %12 : vector<8x1xf32> to vector<1x8x1xf32>
    tpu.vector_store %arg5[%c0_10, %c0_11, %c0_12], %15 {strides = array<i32>} : memref<1x8x1xf32, #tpu.memory_space<vmem>>, vector<1x8x1xf32>,
    return
  }
  func.func @transform_0(%arg0: i32) -> (i32, i32) {
    %c0_i32 = arith.constant 0 : i32
    %0 = arith.addi %arg0, %c0_i32 : i32
    %c0_i32_0 = arith.constant 0 : i32
    %c0_i32_1 = arith.constant 0 : i32
    return %c0_i32_0, %0 : i32, i32
  }
  func.func @transform_1(%arg0: i32) -> (i32, i32) {
    %c0_i32 = arith.constant 0 : i32
    %c0_i32_0 = arith.constant 0 : i32
    %c0_i32_1 = arith.constant 0 : i32
    return %c0_i32, %c0_i32_0 : i32, i32
  }
  func.func @transform_2(%arg0: i32) -> (i32, i32) {
    %c0_i32 = arith.constant 0 : i32
    %0 = arith.addi %arg0, %c0_i32 : i32
    %c0_i32_0 = arith.constant 0 : i32
    %c0_i32_1 = arith.constant 0 : i32
    return %c0_i32_0, %0 : i32, i32
  }
  func.func @transform_3(%arg0: i32) -> (i32, i32, i32) {
    %c0_i32 = arith.constant 0 : i32
    %c0_i32_0 = arith.constant 0 : i32
    %c0_i32_1 = arith.constant 0 : i32
    return %arg0, %c0_i32, %c0_i32_0 : i32, i32, i32
  }
  func.func @transform_4(%arg0: i32) -> (i32, i32, i32) {
    %c0_i32 = arith.constant 0 : i32
    %c0_i32_0 = arith.constant 0 : i32
    %c0_i32_1 = arith.constant 0 : i32
    return %arg0, %c0_i32, %c0_i32_0 : i32, i32, i32
  }
}

module attributes {stable_mosaic.version = 11 : i64} {
  func.func @_conv2_down_kernel(%arg0: i32, %arg1: memref<1x256xf32, #tpu.memory_space<vmem>>, %arg2: memref<1x256xf32, #tpu.memory_space<vmem>>, %arg3: memref<1x256xf32, #tpu.memory_space<vmem>>, %arg4: memref<8x256xbf16, #tpu.memory_space<vmem>>, %arg5: memref<8x256xbf16, #tpu.memory_space<vmem>>, %arg6: memref<9x8x8xbf16, #tpu.memory_space<vmem>>, %arg7: memref<8x1xf32, #tpu.memory_space<vmem>>, %arg8: memref<8x1xf32, #tpu.memory_space<vmem>>, %arg9: memref<4x256xbf16, #tpu.memory_space<vmem>>, %arg10: memref<8x4xbf16, #tpu.memory_space<vmem>>, %arg11: memref<8x256xbf16, #tpu.memory_space<vmem>>, %arg12: memref<1x8x1xf32, #tpu.memory_space<vmem>>, %arg13: memref<1x8x1xf32, #tpu.memory_space<vmem>>, %arg14: memref<1x8x1xf32, #tpu.memory_space<vmem>>, %arg15: memref<1x8x1xf32, #tpu.memory_space<vmem>>) attributes {dimension_semantics = [#tpu.dimension_semantics<parallel>], iteration_bounds = array<i64: 1>, scalar_prefetch = 0 : i64, scratch_operands = 0 : i64, tpu.core_type = #tpu.core_type<tc>, window_params = [{transform_indices = @transform_0, window_bounds = array<i64: 1, 256>}, {transform_indices = @transform_1, window_bounds = array<i64: 1, 256>}, {transform_indices = @transform_2, window_bounds = array<i64: 1, 256>}, {transform_indices = @transform_3, window_bounds = array<i64: 8, 256>}, {transform_indices = @transform_4, window_bounds = array<i64: 8, 256>}, {pipeline_mode = #tpu.pipeline_mode<synchronous>, transform_indices = @transform_5, window_bounds = array<i64: 9, 8, 8>}, {pipeline_mode = #tpu.pipeline_mode<synchronous>, transform_indices = @transform_6, window_bounds = array<i64: 8, 1>}, {pipeline_mode = #tpu.pipeline_mode<synchronous>, transform_indices = @transform_7, window_bounds = array<i64: 8, 1>}, {transform_indices = @transform_8, window_bounds = array<i64: 4, 256>}, {pipeline_mode = #tpu.pipeline_mode<synchronous>, transform_indices = @transform_9, window_bounds = array<i64: 8, 4>}, {transform_indices = @transform_10, window_bounds = array<i64: 8, 256>}, {transform_indices = @transform_11, window_bounds = array<i64: 1, 8, 1>}, {transform_indices = @transform_12, window_bounds = array<i64: 1, 8, 1>}, {transform_indices = @transform_13, window_bounds = array<i64: 1, 8, 1>}, {transform_indices = @transform_14, window_bounds = array<i64: 1, 8, 1>}]} {
    %c0 = arith.constant 0 : index
    %c0_0 = arith.constant 0 : index
    %0 = vector.load %arg7[%c0, %c0_0] : memref<8x1xf32, #tpu.memory_space<vmem>>, vector<8x1xf32>
    %c0_1 = arith.constant 0 : index
    %c0_2 = arith.constant 0 : index
    %1 = vector.load %arg8[%c0_1, %c0_2] : memref<8x1xf32, #tpu.memory_space<vmem>>, vector<8x1xf32>
    %c0_3 = arith.constant 0 : index
    %c0_4 = arith.constant 0 : index
    %2 = vector.load %arg4[%c0_3, %c0_4] : memref<8x256xbf16, #tpu.memory_space<vmem>>, vector<8x256xbf16>
    %c0_5 = arith.constant 0 : index
    %c0_6 = arith.constant 0 : index
    %3 = vector.load %arg5[%c0_5, %c0_6] : memref<8x256xbf16, #tpu.memory_space<vmem>>, vector<8x256xbf16>
    %4 = tpu.concatenate %2, %3 in 1 : vector<8x256xbf16>, vector<8x256xbf16> -> vector<8x512xbf16>
    %5 = arith.extf %4 : vector<8x512xbf16> to vector<8x512xf32>
    %c0_7 = arith.constant 0 : index
    %c0_8 = arith.constant 0 : index
    %6 = vector.load %arg2[%c0_7, %c0_8] : memref<1x256xf32, #tpu.memory_space<vmem>>, vector<1x256xf32>
    %c0_9 = arith.constant 0 : index
    %c0_10 = arith.constant 0 : index
    %7 = vector.load %arg3[%c0_9, %c0_10] : memref<1x256xf32, #tpu.memory_space<vmem>>, vector<1x256xf32>
    %8 = tpu.concatenate %6, %7 in 1 : vector<1x256xf32>, vector<1x256xf32> -> vector<1x512xf32>
    %9 = vector.broadcast %0 : vector<8x1xf32> to vector<8x512xf32>
    %10 = arith.subf %5, %9 : vector<8x512xf32>
    %11 = vector.broadcast %1 : vector<8x1xf32> to vector<8x512xf32>
    %12 = arith.mulf %10, %11 : vector<8x512xf32>
    %cst = arith.constant 0.000000e+00 : f32
    %13 = vector.broadcast %cst : f32 to vector<8x512xf32>
    %14 = arith.maximumf %12, %13 : vector<8x512xf32>
    %15 = vector.broadcast %8 : vector<1x512xf32> to vector<8x512xf32>
    %16 = arith.mulf %14, %15 : vector<8x512xf32>
    %17 = arith.truncf %16 : vector<8x512xf32> to vector<8x512xbf16>
    %c0_11 = arith.constant 0 : index
    %c0_12 = arith.constant 0 : index
    %18 = vector.load %arg10[%c0_11, %c0_12] : memref<8x4xbf16, #tpu.memory_space<vmem>>, vector<8x4xbf16>
    %c0_13 = arith.constant 0 : index
    %c0_14 = arith.constant 0 : index
    %19 = vector.load %arg9[%c0_13, %c0_14] : memref<4x256xbf16, #tpu.memory_space<vmem>>, vector<4x256xbf16>
    %cst_15 = arith.constant dense<0.000000e+00> : vector<8x256xf32>
    %20 = tpu.matmul %18, %19, %cst_15 {dimension_numbers = #tpu.dot_dimension_numbers<[1], [0], [0], [1], [0, 0, 1, 1], [], []>} : vector<8x4xbf16>, vector<4x256xbf16>, vector<8x256xf32> -> vector<8x256xf32>
    %c0_16 = arith.constant 0 : index
    %c0_17 = arith.constant 0 : index
    %c0_18 = arith.constant 0 : index
    %21 = vector.load %arg6[%c0_16, %c0_17, %c0_18] : memref<9x8x8xbf16, #tpu.memory_space<vmem>>, vector<1x8x8xbf16>
    %22 = vector.shape_cast %21 : vector<1x8x8xbf16> to vector<8x8xbf16>
    %23 = vector.extract_strided_slice %17 {offsets = [0, 0], sizes = [8, 256], strides = [1, 1]} : vector<8x512xbf16> to vector<8x256xbf16>
    %cst_19 = arith.constant dense<0.000000e+00> : vector<8x256xf32>
    %24 = tpu.matmul %22, %23, %cst_19 {dimension_numbers = #tpu.dot_dimension_numbers<[1], [0], [0], [1], [0, 0, 1, 1], [], []>} : vector<8x8xbf16>, vector<8x256xbf16>, vector<8x256xf32> -> vector<8x256xf32>
    %c1 = arith.constant 1 : index
    %c0_20 = arith.constant 0 : index
    %c0_21 = arith.constant 0 : index
    %25 = vector.load %arg6[%c1, %c0_20, %c0_21] : memref<9x8x8xbf16, #tpu.memory_space<vmem>>, vector<1x8x8xbf16>
    %26 = vector.shape_cast %25 : vector<1x8x8xbf16> to vector<8x8xbf16>
    %27 = vector.extract_strided_slice %17 {offsets = [0, 1], sizes = [8, 256], strides = [1, 1]} : vector<8x512xbf16> to vector<8x256xbf16>
    %cst_22 = arith.constant dense<0.000000e+00> : vector<8x256xf32>
    %28 = tpu.matmul %26, %27, %cst_22 {dimension_numbers = #tpu.dot_dimension_numbers<[1], [0], [0], [1], [0, 0, 1, 1], [], []>} : vector<8x8xbf16>, vector<8x256xbf16>, vector<8x256xf32> -> vector<8x256xf32>
    %29 = arith.addf %24, %28 : vector<8x256xf32>
    %c2 = arith.constant 2 : index
    %c0_23 = arith.constant 0 : index
    %c0_24 = arith.constant 0 : index
    %30 = vector.load %arg6[%c2, %c0_23, %c0_24] : memref<9x8x8xbf16, #tpu.memory_space<vmem>>, vector<1x8x8xbf16>
    %31 = vector.shape_cast %30 : vector<1x8x8xbf16> to vector<8x8xbf16>
    %32 = vector.extract_strided_slice %17 {offsets = [0, 2], sizes = [8, 256], strides = [1, 1]} : vector<8x512xbf16> to vector<8x256xbf16>
    %cst_25 = arith.constant dense<0.000000e+00> : vector<8x256xf32>
    %33 = tpu.matmul %31, %32, %cst_25 {dimension_numbers = #tpu.dot_dimension_numbers<[1], [0], [0], [1], [0, 0, 1, 1], [], []>} : vector<8x8xbf16>, vector<8x256xbf16>, vector<8x256xf32> -> vector<8x256xf32>
    %34 = arith.addf %29, %33 : vector<8x256xf32>
    %c3 = arith.constant 3 : index
    %c0_26 = arith.constant 0 : index
    %c0_27 = arith.constant 0 : index
    %35 = vector.load %arg6[%c3, %c0_26, %c0_27] : memref<9x8x8xbf16, #tpu.memory_space<vmem>>, vector<1x8x8xbf16>
    %36 = vector.shape_cast %35 : vector<1x8x8xbf16> to vector<8x8xbf16>
    %37 = vector.extract_strided_slice %17 {offsets = [0, 10], sizes = [8, 256], strides = [1, 1]} : vector<8x512xbf16> to vector<8x256xbf16>
    %cst_28 = arith.constant dense<0.000000e+00> : vector<8x256xf32>
    %38 = tpu.matmul %36, %37, %cst_28 {dimension_numbers = #tpu.dot_dimension_numbers<[1], [0], [0], [1], [0, 0, 1, 1], [], []>} : vector<8x8xbf16>, vector<8x256xbf16>, vector<8x256xf32> -> vector<8x256xf32>
    %39 = arith.addf %34, %38 : vector<8x256xf32>
    %c4 = arith.constant 4 : index
    %c0_29 = arith.constant 0 : index
    %c0_30 = arith.constant 0 : index
    %40 = vector.load %arg6[%c4, %c0_29, %c0_30] : memref<9x8x8xbf16, #tpu.memory_space<vmem>>, vector<1x8x8xbf16>
    %41 = vector.shape_cast %40 : vector<1x8x8xbf16> to vector<8x8xbf16>
    %42 = vector.extract_strided_slice %17 {offsets = [0, 11], sizes = [8, 256], strides = [1, 1]} : vector<8x512xbf16> to vector<8x256xbf16>
    %cst_31 = arith.constant dense<0.000000e+00> : vector<8x256xf32>
    %43 = tpu.matmul %41, %42, %cst_31 {dimension_numbers = #tpu.dot_dimension_numbers<[1], [0], [0], [1], [0, 0, 1, 1], [], []>} : vector<8x8xbf16>, vector<8x256xbf16>, vector<8x256xf32> -> vector<8x256xf32>
    %44 = arith.addf %39, %43 : vector<8x256xf32>
    %c5 = arith.constant 5 : index
    %c0_32 = arith.constant 0 : index
    %c0_33 = arith.constant 0 : index
    %45 = vector.load %arg6[%c5, %c0_32, %c0_33] : memref<9x8x8xbf16, #tpu.memory_space<vmem>>, vector<1x8x8xbf16>
    %46 = vector.shape_cast %45 : vector<1x8x8xbf16> to vector<8x8xbf16>
    %47 = vector.extract_strided_slice %17 {offsets = [0, 12], sizes = [8, 256], strides = [1, 1]} : vector<8x512xbf16> to vector<8x256xbf16>
    %cst_34 = arith.constant dense<0.000000e+00> : vector<8x256xf32>
    %48 = tpu.matmul %46, %47, %cst_34 {dimension_numbers = #tpu.dot_dimension_numbers<[1], [0], [0], [1], [0, 0, 1, 1], [], []>} : vector<8x8xbf16>, vector<8x256xbf16>, vector<8x256xf32> -> vector<8x256xf32>
    %49 = arith.addf %44, %48 : vector<8x256xf32>
    %c6 = arith.constant 6 : index
    %c0_35 = arith.constant 0 : index
    %c0_36 = arith.constant 0 : index
    %50 = vector.load %arg6[%c6, %c0_35, %c0_36] : memref<9x8x8xbf16, #tpu.memory_space<vmem>>, vector<1x8x8xbf16>
    %51 = vector.shape_cast %50 : vector<1x8x8xbf16> to vector<8x8xbf16>
    %52 = vector.extract_strided_slice %17 {offsets = [0, 20], sizes = [8, 256], strides = [1, 1]} : vector<8x512xbf16> to vector<8x256xbf16>
    %cst_37 = arith.constant dense<0.000000e+00> : vector<8x256xf32>
    %53 = tpu.matmul %51, %52, %cst_37 {dimension_numbers = #tpu.dot_dimension_numbers<[1], [0], [0], [1], [0, 0, 1, 1], [], []>} : vector<8x8xbf16>, vector<8x256xbf16>, vector<8x256xf32> -> vector<8x256xf32>
    %54 = arith.addf %49, %53 : vector<8x256xf32>
    %c7 = arith.constant 7 : index
    %c0_38 = arith.constant 0 : index
    %c0_39 = arith.constant 0 : index
    %55 = vector.load %arg6[%c7, %c0_38, %c0_39] : memref<9x8x8xbf16, #tpu.memory_space<vmem>>, vector<1x8x8xbf16>
    %56 = vector.shape_cast %55 : vector<1x8x8xbf16> to vector<8x8xbf16>
    %57 = vector.extract_strided_slice %17 {offsets = [0, 21], sizes = [8, 256], strides = [1, 1]} : vector<8x512xbf16> to vector<8x256xbf16>
    %cst_40 = arith.constant dense<0.000000e+00> : vector<8x256xf32>
    %58 = tpu.matmul %56, %57, %cst_40 {dimension_numbers = #tpu.dot_dimension_numbers<[1], [0], [0], [1], [0, 0, 1, 1], [], []>} : vector<8x8xbf16>, vector<8x256xbf16>, vector<8x256xf32> -> vector<8x256xf32>
    %59 = arith.addf %54, %58 : vector<8x256xf32>
    %c8 = arith.constant 8 : index
    %c0_41 = arith.constant 0 : index
    %c0_42 = arith.constant 0 : index
    %60 = vector.load %arg6[%c8, %c0_41, %c0_42] : memref<9x8x8xbf16, #tpu.memory_space<vmem>>, vector<1x8x8xbf16>
    %61 = vector.shape_cast %60 : vector<1x8x8xbf16> to vector<8x8xbf16>
    %62 = vector.extract_strided_slice %17 {offsets = [0, 22], sizes = [8, 256], strides = [1, 1]} : vector<8x512xbf16> to vector<8x256xbf16>
    %cst_43 = arith.constant dense<0.000000e+00> : vector<8x256xf32>
    %63 = tpu.matmul %61, %62, %cst_43 {dimension_numbers = #tpu.dot_dimension_numbers<[1], [0], [0], [1], [0, 0, 1, 1], [], []>} : vector<8x8xbf16>, vector<8x256xbf16>, vector<8x256xf32> -> vector<8x256xf32>
    %64 = arith.addf %59, %63 : vector<8x256xf32>
    %65 = arith.truncf %64 : vector<8x256xf32> to vector<8x256xbf16>
    %c0_44 = arith.constant 0 : index
    %c0_45 = arith.constant 0 : index
    %66 = vector.load %arg11[%c0_44, %c0_45] : memref<8x256xbf16, #tpu.memory_space<vmem>>, vector<8x256xbf16>
    tpu.vector_store %arg11[%c0_44, %c0_45], %65 {strides = array<i32>} : memref<8x256xbf16, #tpu.memory_space<vmem>>, vector<8x256xbf16>,
    %c0_46 = arith.constant 0 : index
    %c0_47 = arith.constant 0 : index
    %67 = vector.load %arg1[%c0_46, %c0_47] : memref<1x256xf32, #tpu.memory_space<vmem>>, vector<1x256xf32>
    %68 = vector.broadcast %67 : vector<1x256xf32> to vector<8x256xf32>
    %69 = arith.mulf %64, %68 : vector<8x256xf32>
    %cst_48 = arith.constant dense<0.000000e+00> : vector<8xf32>
    %70 = vector.multi_reduction <add>, %69, %cst_48 [1] : vector<8x256xf32> to vector<8xf32>
    %71 = vector.shape_cast %70 : vector<8xf32> to vector<8x1xf32>
    %c0_49 = arith.constant 0 : index
    %c0_50 = arith.constant 0 : index
    %c0_51 = arith.constant 0 : index
    %72 = vector.load %arg12[%c0_49, %c0_50, %c0_51] : memref<1x8x1xf32, #tpu.memory_space<vmem>>, vector<1x8x1xf32>
    %73 = vector.shape_cast %72 : vector<1x8x1xf32> to vector<8x1xf32>
    %74 = vector.shape_cast %71 : vector<8x1xf32> to vector<1x8x1xf32>
    tpu.vector_store %arg12[%c0_49, %c0_50, %c0_51], %74 {strides = array<i32>} : memref<1x8x1xf32, #tpu.memory_space<vmem>>, vector<1x8x1xf32>,
    %75 = arith.mulf %64, %64 : vector<8x256xf32>
    %76 = vector.broadcast %67 : vector<1x256xf32> to vector<8x256xf32>
    %77 = arith.mulf %75, %76 : vector<8x256xf32>
    %cst_52 = arith.constant dense<0.000000e+00> : vector<8xf32>
    %78 = vector.multi_reduction <add>, %77, %cst_52 [1] : vector<8x256xf32> to vector<8xf32>
    %79 = vector.shape_cast %78 : vector<8xf32> to vector<8x1xf32>
    %c0_53 = arith.constant 0 : index
    %c0_54 = arith.constant 0 : index
    %c0_55 = arith.constant 0 : index
    %80 = vector.load %arg13[%c0_53, %c0_54, %c0_55] : memref<1x8x1xf32, #tpu.memory_space<vmem>>, vector<1x8x1xf32>
    %81 = vector.shape_cast %80 : vector<1x8x1xf32> to vector<8x1xf32>
    %82 = vector.shape_cast %79 : vector<8x1xf32> to vector<1x8x1xf32>
    tpu.vector_store %arg13[%c0_53, %c0_54, %c0_55], %82 {strides = array<i32>} : memref<1x8x1xf32, #tpu.memory_space<vmem>>, vector<1x8x1xf32>,
    %83 = vector.broadcast %67 : vector<1x256xf32> to vector<8x256xf32>
    %84 = arith.mulf %20, %83 : vector<8x256xf32>
    %cst_56 = arith.constant dense<0.000000e+00> : vector<8xf32>
    %85 = vector.multi_reduction <add>, %84, %cst_56 [1] : vector<8x256xf32> to vector<8xf32>
    %86 = vector.shape_cast %85 : vector<8xf32> to vector<8x1xf32>
    %c0_57 = arith.constant 0 : index
    %c0_58 = arith.constant 0 : index
    %c0_59 = arith.constant 0 : index
    %87 = vector.load %arg14[%c0_57, %c0_58, %c0_59] : memref<1x8x1xf32, #tpu.memory_space<vmem>>, vector<1x8x1xf32>
    %88 = vector.shape_cast %87 : vector<1x8x1xf32> to vector<8x1xf32>
    %89 = vector.shape_cast %86 : vector<8x1xf32> to vector<1x8x1xf32>
    tpu.vector_store %arg14[%c0_57, %c0_58, %c0_59], %89 {strides = array<i32>} : memref<1x8x1xf32, #tpu.memory_space<vmem>>, vector<1x8x1xf32>,
    %90 = arith.mulf %20, %20 : vector<8x256xf32>
    %91 = vector.broadcast %67 : vector<1x256xf32> to vector<8x256xf32>
    %92 = arith.mulf %90, %91 : vector<8x256xf32>
    %cst_60 = arith.constant dense<0.000000e+00> : vector<8xf32>
    %93 = vector.multi_reduction <add>, %92, %cst_60 [1] : vector<8x256xf32> to vector<8xf32>
    %94 = vector.shape_cast %93 : vector<8xf32> to vector<8x1xf32>
    %c0_61 = arith.constant 0 : index
    %c0_62 = arith.constant 0 : index
    %c0_63 = arith.constant 0 : index
    %95 = vector.load %arg15[%c0_61, %c0_62, %c0_63] : memref<1x8x1xf32, #tpu.memory_space<vmem>>, vector<1x8x1xf32>
    %96 = vector.shape_cast %95 : vector<1x8x1xf32> to vector<8x1xf32>
    %97 = vector.shape_cast %94 : vector<8x1xf32> to vector<1x8x1xf32>
    tpu.vector_store %arg15[%c0_61, %c0_62, %c0_63], %97 {strides = array<i32>} : memref<1x8x1xf32, #tpu.memory_space<vmem>>, vector<1x8x1xf32>,
    return
  }
  func.func @transform_0(%arg0: i32) -> (i32, i32) {
    %c0_i32 = arith.constant 0 : i32
    %0 = arith.addi %arg0, %c0_i32 : i32
    %c0_i32_0 = arith.constant 0 : i32
    %c0_i32_1 = arith.constant 0 : i32
    return %c0_i32_0, %0 : i32, i32
  }
  func.func @transform_1(%arg0: i32) -> (i32, i32) {
    %c0_i32 = arith.constant 0 : i32
    %0 = arith.addi %arg0, %c0_i32 : i32
    %c0_i32_0 = arith.constant 0 : i32
    %c0_i32_1 = arith.constant 0 : i32
    return %c0_i32_0, %0 : i32, i32
  }
  func.func @transform_2(%arg0: i32) -> (i32, i32) {
    %c1_i32 = arith.constant 1 : i32
    %0 = arith.addi %arg0, %c1_i32 : i32
    %c0_i32 = arith.constant 0 : i32
    %c0_i32_0 = arith.constant 0 : i32
    return %c0_i32, %0 : i32, i32
  }
  func.func @transform_3(%arg0: i32) -> (i32, i32) {
    %c0_i32 = arith.constant 0 : i32
    %0 = arith.addi %arg0, %c0_i32 : i32
    %c0_i32_0 = arith.constant 0 : i32
    %c0_i32_1 = arith.constant 0 : i32
    return %c0_i32_0, %0 : i32, i32
  }
  func.func @transform_4(%arg0: i32) -> (i32, i32) {
    %c1_i32 = arith.constant 1 : i32
    %0 = arith.addi %arg0, %c1_i32 : i32
    %c0_i32 = arith.constant 0 : i32
    %c0_i32_0 = arith.constant 0 : i32
    return %c0_i32, %0 : i32, i32
  }
  func.func @transform_5(%arg0: i32) -> (i32, i32, i32) {
    %c0_i32 = arith.constant 0 : i32
    %c0_i32_0 = arith.constant 0 : i32
    %c0_i32_1 = arith.constant 0 : i32
    %c0_i32_2 = arith.constant 0 : i32
    return %c0_i32, %c0_i32_0, %c0_i32_1 : i32, i32, i32
  }
  func.func @transform_6(%arg0: i32) -> (i32, i32) {
    %c0_i32 = arith.constant 0 : i32
    %c0_i32_0 = arith.constant 0 : i32
    %c0_i32_1 = arith.constant 0 : i32
    return %c0_i32, %c0_i32_0 : i32, i32
  }
  func.func @transform_7(%arg0: i32) -> (i32, i32) {
    %c0_i32 = arith.constant 0 : i32
    %c0_i32_0 = arith.constant 0 : i32
    %c0_i32_1 = arith.constant 0 : i32
    return %c0_i32, %c0_i32_0 : i32, i32
  }
  func.func @transform_8(%arg0: i32) -> (i32, i32) {
    %c0_i32 = arith.constant 0 : i32
    %0 = arith.addi %arg0, %c0_i32 : i32
    %c0_i32_0 = arith.constant 0 : i32
    %c0_i32_1 = arith.constant 0 : i32
    return %c0_i32_0, %0 : i32, i32
  }
  func.func @transform_9(%arg0: i32) -> (i32, i32) {
    %c0_i32 = arith.constant 0 : i32
    %c0_i32_0 = arith.constant 0 : i32
    %c0_i32_1 = arith.constant 0 : i32
    return %c0_i32, %c0_i32_0 : i32, i32
  }
  func.func @transform_10(%arg0: i32) -> (i32, i32) {
    %c0_i32 = arith.constant 0 : i32
    %0 = arith.addi %arg0, %c0_i32 : i32
    %c0_i32_0 = arith.constant 0 : i32
    %c0_i32_1 = arith.constant 0 : i32
    return %c0_i32_0, %0 : i32, i32
  }
  func.func @transform_11(%arg0: i32) -> (i32, i32, i32) {
    %c0_i32 = arith.constant 0 : i32
    %c0_i32_0 = arith.constant 0 : i32
    %c0_i32_1 = arith.constant 0 : i32
    return %arg0, %c0_i32, %c0_i32_0 : i32, i32, i32
  }
  func.func @transform_12(%arg0: i32) -> (i32, i32, i32) {
    %c0_i32 = arith.constant 0 : i32
    %c0_i32_0 = arith.constant 0 : i32
    %c0_i32_1 = arith.constant 0 : i32
    return %arg0, %c0_i32, %c0_i32_0 : i32, i32, i32
  }
  func.func @transform_13(%arg0: i32) -> (i32, i32, i32) {
    %c0_i32 = arith.constant 0 : i32
    %c0_i32_0 = arith.constant 0 : i32
    %c0_i32_1 = arith.constant 0 : i32
    return %arg0, %c0_i32, %c0_i32_0 : i32, i32, i32
  }
  func.func @transform_14(%arg0: i32) -> (i32, i32, i32) {
    %c0_i32 = arith.constant 0 : i32
    %c0_i32_0 = arith.constant 0 : i32
    %c0_i32_1 = arith.constant 0 : i32
    return %arg0, %c0_i32, %c0_i32_0 : i32, i32, i32
  }
}

module attributes {stable_mosaic.version = 11 : i64} {
  func.func @_final_down_kernel(%arg0: i32, %arg1: memref<8x256xbf16, #tpu.memory_space<vmem>>, %arg2: memref<8x1xf32, #tpu.memory_space<vmem>>, %arg3: memref<8x1xf32, #tpu.memory_space<vmem>>, %arg4: memref<4x256xbf16, #tpu.memory_space<vmem>>, %arg5: memref<8x4xbf16, #tpu.memory_space<vmem>>, %arg6: memref<8x1xf32, #tpu.memory_space<vmem>>, %arg7: memref<8x1xf32, #tpu.memory_space<vmem>>, %arg8: memref<8x256xf32, #tpu.memory_space<vmem>>) attributes {dimension_semantics = [#tpu.dimension_semantics<parallel>], iteration_bounds = array<i64: 1>, scalar_prefetch = 0 : i64, scratch_operands = 0 : i64, tpu.core_type = #tpu.core_type<tc>, window_params = [{transform_indices = @transform_0, window_bounds = array<i64: 8, 256>}, {pipeline_mode = #tpu.pipeline_mode<synchronous>, transform_indices = @transform_1, window_bounds = array<i64: 8, 1>}, {pipeline_mode = #tpu.pipeline_mode<synchronous>, transform_indices = @transform_2, window_bounds = array<i64: 8, 1>}, {transform_indices = @transform_3, window_bounds = array<i64: 4, 256>}, {pipeline_mode = #tpu.pipeline_mode<synchronous>, transform_indices = @transform_4, window_bounds = array<i64: 8, 4>}, {pipeline_mode = #tpu.pipeline_mode<synchronous>, transform_indices = @transform_5, window_bounds = array<i64: 8, 1>}, {pipeline_mode = #tpu.pipeline_mode<synchronous>, transform_indices = @transform_6, window_bounds = array<i64: 8, 1>}, {transform_indices = @transform_7, window_bounds = array<i64: 8, 256>}]} {
    %c0 = arith.constant 0 : index
    %c0_0 = arith.constant 0 : index
    %0 = vector.load %arg5[%c0, %c0_0] : memref<8x4xbf16, #tpu.memory_space<vmem>>, vector<8x4xbf16>
    %c0_1 = arith.constant 0 : index
    %c0_2 = arith.constant 0 : index
    %1 = vector.load %arg4[%c0_1, %c0_2] : memref<4x256xbf16, #tpu.memory_space<vmem>>, vector<4x256xbf16>
    %cst = arith.constant dense<0.000000e+00> : vector<8x256xf32>
    %2 = tpu.matmul %0, %1, %cst {dimension_numbers = #tpu.dot_dimension_numbers<[1], [0], [0], [1], [0, 0, 1, 1], [], []>} : vector<8x4xbf16>, vector<4x256xbf16>, vector<8x256xf32> -> vector<8x256xf32>
    %c0_3 = arith.constant 0 : index
    %c0_4 = arith.constant 0 : index
    %3 = vector.load %arg1[%c0_3, %c0_4] : memref<8x256xbf16, #tpu.memory_space<vmem>>, vector<8x256xbf16>
    %4 = arith.extf %3 : vector<8x256xbf16> to vector<8x256xf32>
    %c0_5 = arith.constant 0 : index
    %c0_6 = arith.constant 0 : index
    %5 = vector.load %arg2[%c0_5, %c0_6] : memref<8x1xf32, #tpu.memory_space<vmem>>, vector<8x1xf32>
    %6 = vector.broadcast %5 : vector<8x1xf32> to vector<8x256xf32>
    %7 = arith.subf %4, %6 : vector<8x256xf32>
    %c0_7 = arith.constant 0 : index
    %c0_8 = arith.constant 0 : index
    %8 = vector.load %arg3[%c0_7, %c0_8] : memref<8x1xf32, #tpu.memory_space<vmem>>, vector<8x1xf32>
    %9 = vector.broadcast %8 : vector<8x1xf32> to vector<8x256xf32>
    %10 = arith.mulf %7, %9 : vector<8x256xf32>
    %c0_9 = arith.constant 0 : index
    %c0_10 = arith.constant 0 : index
    %11 = vector.load %arg6[%c0_9, %c0_10] : memref<8x1xf32, #tpu.memory_space<vmem>>, vector<8x1xf32>
    %12 = vector.broadcast %11 : vector<8x1xf32> to vector<8x256xf32>
    %13 = arith.subf %2, %12 : vector<8x256xf32>
    %c0_11 = arith.constant 0 : index
    %c0_12 = arith.constant 0 : index
    %14 = vector.load %arg7[%c0_11, %c0_12] : memref<8x1xf32, #tpu.memory_space<vmem>>, vector<8x1xf32>
    %15 = vector.broadcast %14 : vector<8x1xf32> to vector<8x256xf32>
    %16 = arith.mulf %13, %15 : vector<8x256xf32>
    %17 = arith.addf %10, %16 : vector<8x256xf32>
    %cst_13 = arith.constant 0.000000e+00 : f32
    %18 = vector.broadcast %cst_13 : f32 to vector<8x256xf32>
    %19 = arith.maximumf %17, %18 : vector<8x256xf32>
    %c0_14 = arith.constant 0 : index
    %c0_15 = arith.constant 0 : index
    %20 = vector.load %arg8[%c0_14, %c0_15] : memref<8x256xf32, #tpu.memory_space<vmem>>, vector<8x256xf32>
    tpu.vector_store %arg8[%c0_14, %c0_15], %19 {strides = array<i32>} : memref<8x256xf32, #tpu.memory_space<vmem>>, vector<8x256xf32>,
    return
  }
  func.func @transform_0(%arg0: i32) -> (i32, i32) {
    %c0_i32 = arith.constant 0 : i32
    %0 = arith.addi %arg0, %c0_i32 : i32
    %c0_i32_0 = arith.constant 0 : i32
    %c0_i32_1 = arith.constant 0 : i32
    return %c0_i32_0, %0 : i32, i32
  }
  func.func @transform_1(%arg0: i32) -> (i32, i32) {
    %c0_i32 = arith.constant 0 : i32
    %c0_i32_0 = arith.constant 0 : i32
    %c0_i32_1 = arith.constant 0 : i32
    return %c0_i32, %c0_i32_0 : i32, i32
  }
  func.func @transform_2(%arg0: i32) -> (i32, i32) {
    %c0_i32 = arith.constant 0 : i32
    %c0_i32_0 = arith.constant 0 : i32
    %c0_i32_1 = arith.constant 0 : i32
    return %c0_i32, %c0_i32_0 : i32, i32
  }
  func.func @transform_3(%arg0: i32) -> (i32, i32) {
    %c0_i32 = arith.constant 0 : i32
    %0 = arith.addi %arg0, %c0_i32 : i32
    %c0_i32_0 = arith.constant 0 : i32
    %c0_i32_1 = arith.constant 0 : i32
    return %c0_i32_0, %0 : i32, i32
  }
  func.func @transform_4(%arg0: i32) -> (i32, i32) {
    %c0_i32 = arith.constant 0 : i32
    %c0_i32_0 = arith.constant 0 : i32
    %c0_i32_1 = arith.constant 0 : i32
    return %c0_i32, %c0_i32_0 : i32, i32
  }
  func.func @transform_5(%arg0: i32) -> (i32, i32) {
    %c0_i32 = arith.constant 0 : i32
    %c0_i32_0 = arith.constant 0 : i32
    %c0_i32_1 = arith.constant 0 : i32
    return %c0_i32, %c0_i32_0 : i32, i32
  }
  func.func @transform_6(%arg0: i32) -> (i32, i32) {
    %c0_i32 = arith.constant 0 : i32
    %c0_i32_0 = arith.constant 0 : i32
    %c0_i32_1 = arith.constant 0 : i32
    return %c0_i32, %c0_i32_0 : i32, i32
  }
  func.func @transform_7(%arg0: i32) -> (i32, i32) {
    %c0_i32 = arith.constant 0 : i32
    %0 = arith.addi %arg0, %c0_i32 : i32
    %c0_i32_0 = arith.constant 0 : i32
    %c0_i32_1 = arith.constant 0 : i32
    return %c0_i32_0, %0 : i32, i32
  }
}

</mosaic_0001>

<bundles_post_ra>
// kernel: down_res_block_pallas.5
= control target key start
LH: loop header
LB: loop body
LE: loop exit
PB: predicated region body
PF: predicated region fallthrough
CT: control target
= control target key end

     0   :  { %vm42_vm0 = vcmask 1041408   ;;  %v141_v1 = vmov 0   ;;  %vm38_vm1 = vcmask 31744   ;;  %s211_s3 = inlined_call_operand.vmem [shape: bf16[4,256], index: 3, kind: input, shape index: {}]   ;;  %s212_s1 = inlined_call_operand.vmem [shape: f32[8,1], index: 1, kind: input, shape index: {}]   ;;  %s213_s2 = inlined_call_operand.vmem [shape: f32[8,1], index: 2, kind: input, shape index: {}]   ;;  %s214_s5 = inlined_call_operand.vmem [shape: f32[8,1], index: 5, kind: input, shape index: {}]   ;;  %s215_s6 = inlined_call_operand.vmem [shape: f32[8,1], index: 6, kind: input, shape index: {}]   ;;  %s216_s4 = inlined_call_operand.vmem [shape: bf16[8,4], index: 4, kind: input, shape index: {}]   ;;  %s217_s0 = inlined_call_operand.vmem [shape: bf16[8,256], index: 0, kind: input, shape index: {}]   ;;  %s218_s7 = inlined_call_operand.vmem [shape: f32[8,256], index: 7, kind: output, shape index: {}]  }
   0x1   :  { %v135_v0 = vld.sshfl [vmem:[%s211_s3] sm:$0x33 pattern:$0x76325410]  ;;  %81 = vmatprep.mubr.bf16.mxu0 %v141_v1  ;;  %139 = vset.pattern.permute.xlu0 %v141_v1 }
   0x2   :  { %v37_v2 = vcombine.high %v135_v0, %v135_v0  ;;  %v44_v3 = vsel %vm42_vm0, %v135_v0, 0  ;;  %v93_v4 = vld [vmem:[%s212_s1] sm:$0xff]  ;;  %140 = vset.pattern.permute.xlu1 %v141_v1 }
   0x3   :  { %v101_v5 = vld [vmem:[%s213_s2] sm:$0xff]  ;;  %96 = vperm.xlu0 %139, %v93_v4  }
   0x4   :  { %104 = vperm.xlu1 %140, %v101_v5   ;;  %136 = vmatprep.subr.msk.bf16.mxu0 %vm42_vm0, %v37_v2  ;;  %v109_v6 = vld [vmem:[%s214_s5] sm:$0xff] }
   0x5   :  { %v117_v7 = vld [vmem:[%s215_s6] sm:$0xff]  ;;  %50 = vmatpush1.bf16.msra.mxu0 %v44_v3 }
   0x6   :  { %v27_v8 = vld [vmem:[%s216_s4] sm:$0xf] }
   0x7   :  { %112 = vperm.xlu0 %139, %v109_v6   ;;  %v90_v9 = vld [vmem:[%s217_s0] sm:$0xff] }
   0x8   :  { %120 = vperm.xlu1 %140, %v117_v7   ;;  %137 = vmatmul.mubr.msk.bf16.vlgmr.msra.gmra.mrb[0].mxu0 %vm38_vm1, %v27_v8  ;;  %v91_v11 = vunpack.c.l.bf16 %v90_v9  ;;  %v92_v12 = vunpack.c.h.bf16 %v90_v9 }
  0x82   :  { %v97_v10 = vpop.permute.xlu0 %96 }
  0x83   :  { %v105_v13 = vpop.permute.xlu1 %104  ;;  %v99_v14 = vsub.f32 %v91_v11, %v97_v10  ;;  %v100_v15 = vsub.f32 %v92_v12, %v97_v10 }
  0x85   :  { %v107_v23 = vmul.f32 %v105_v13, %v99_v14  ;;  %v108_v26 = vmul.f32 %v105_v13, %v100_v15 }
  0x86   :  { %v113_v16 = vpop.permute.xlu0 %112 }
  0x87   :  { %v121_v20 = vpop.permute.xlu1 %120 }
  0xdb   :  { %v83_v17 = vpop.f32.mrb[0].mxu0 }
  0xdc   :  { %v115_v18 = vsub.f32 %v83_v17, %v113_v16  ;;  %v85_v19 = vpop.f32.mrb[1].mxu0 }
  0xdd   :  { %v116_v21 = vsub.f32 %v85_v19, %v113_v16  ;;  %v87_v22 = vpop.f32.mrb[2].mxu0 }
  0xde   :  { %v123_v24 = vmul.f32 %v121_v20, %v115_v18  ;;  %v88_v25 = vpop.f32.mrb[3].mxu0 }
  0xdf   :  { %v124_v27 = vmul.f32 %v121_v20, %v116_v21 }
  0xe0   :  { %v125_v28 = vadd.f32 %v123_v24, %v107_v23 }
  0xe1   :  { %v126_v29 = vadd.f32 %v124_v27, %v108_v26 }
  0xe2   :  { %v127_v30 = vmax.f32 %v125_v28, 0.0 }
  0xe3   :  { %v128_v31 = vmax.f32 %v126_v29, 0.0 }
  0xe4   :  { %129 = vst [vmem:[%s218_s7] sm:$0xff] %v127_v30 }
  0xe5   :  { %130 = vst [vmem:[%s218_s7 + $0x8] sm:$0xff] %v128_v31 }

// kernel: down_res_block_pallas.3
= control target key start
LH: loop header
LB: loop body
LE: loop exit
PB: predicated region body
PF: predicated region fallthrough
CT: control target
= control target key end

     0   :  { %v129_v0 = vmov 0.0   ;;  %vm130_vm0 = vmmov 0   ;;  %vm40_vm1 = vcmask 1041408   ;;  %vm36_vm2 = vcmask 293888   ;;  %s177_s0 = inlined_call_operand.vmem [shape: bf16[36,128], index: 0, kind: input, shape index: {}]   ;;  %s178_s1 = inlined_call_operand.vmem [shape: bf16[8,36], index: 1, kind: input, shape index: {}]   ;;  %s179_s2 = inlined_call_operand.vmem [shape: bf16[8,128], index: 2, kind: output, shape index: {0}]   ;;  %s180_s3 = inlined_call_operand.vmem [shape: f32[1,8,1], index: 3, kind: output, shape index: {1}]   ;;  %s181_s4 = inlined_call_operand.vmem [shape: f32[1,8,1], index: 4, kind: output, shape index: {2}]  }
   0x1   :  { %114 = vmatprep.subr.bf16.mxu0 %v129_v0  ;;  %v126_v1 = vld [vmem:[%s177_s0] sm:$0xff]   ;;  %120 = vmatprep.mubr.msk.bf16.mxu0 %vm130_vm0, %v129_v0  ;;  %v127_v2 = vld [vmem:[%s177_s0 + $0x8] sm:$0xff]   ;;  %v128_v3 = vld [vmem:[%s177_s0 + $0x10] ss:$0 sps:$4 sm:$0x33]   ;;  %vm88_vm3 = vcmask 7168  }
   0x2   :  { %115 = vmatpush3.bf16.msra.mxu0 %v126_v1  ;;  %v42_v4 = vsel %vm40_vm1, %v128_v3, 0  ;;  %v15_v5 = vld [vmem:[%s178_s1] sm:$0xf] }
   0x3   :  { %116 = vmatprep.subr.bf16.mxu0 %v129_v0 }
   0x6   :  { %117 = vmatpush3.bf16.msra.mxu0 %v127_v2 }
   0x7   :  { %118 = vmatprep.subr.bf16.mxu0 %v129_v0 }
   0xa   :  { %119 = vmatpush3.bf16.msra.mxu0 %v42_v4 }
   0xd   :  { %121 = vmatmul.mubr.msk.bf16.vlgmr.msra.gmra.mrb[0].mxu0 %vm36_vm2, %v15_v5 }
  0xe0   :  { %v78_v6 = vpop.f32.mrb[0].mxu0 }
  0xe1   :  { %v84_v7 = vpack.c.bf16 %v78_v6, %v78_v6  ;;  %86 = vadd.xlane.f32.xlu0 %v78_v6  ;;  %v122_v8 = vpop.f32.mrb[1].mxu0  ;;  %v90_v11 = vmul.f32 %v78_v6, %v78_v6 }
  0xe2   :  { %v81_v9 = vpop.f32.mrb[2].mxu0 }
  0xe3   :  { %85 = vst [vmem:[%s179_s2] sm:$0xf] %v84_v7  ;;  %v123_v10 = vpop.f32.mrb[3].mxu0 }
  0xe5   :  { %91 = vadd.xlane.f32.xlu0 %v90_v11 }
 0x16e   :  { %v87_v12 = vpop.xlane.xlu0 %86 }
 0x16f   :  { %89 = vst.msk [vmem:[%s180_s3] sm:$0xff] %vm88_vm3, %v87_v12 }
 0x172   :  { %v92_v13 = vpop.xlane.xlu0 %91 }
 0x173   :  { %93 = vst.msk [vmem:[%s181_s4] sm:$0xff] %vm88_vm3, %v92_v13 }

// kernel: down_res_block_pallas.4
= control target key start
LH: loop header
LB: loop body
LE: loop exit
PB: predicated region body
PF: predicated region fallthrough
CT: control target
= control target key end

     0   :  { %v935_v0 = vmov 0   ;;  %v103_v3 = vlaneseq  ;;  %vm171_vm0 = vcmask 1041408   ;;  %vm167_vm1 = vcmask 31744   ;;  %s937_s23 = smov 127   ;;  %s938_s24 = smov 116   ;;  %s1153_s6 = inlined_call_operand.vmem [shape: f32[8,1], index: 6, kind: input, shape index: {}]   ;;  %s1154_s7 = inlined_call_operand.vmem [shape: f32[8,1], index: 7, kind: input, shape index: {}]   ;;  %s1155_s4 = inlined_call_operand.vmem [shape: bf16[8,512], index: 4, kind: input, shape index: {}, may-alias: {3,4}]   ;;  %s1156_s3 = inlined_call_operand.vmem [shape: bf16[8,512], index: 3, kind: input, shape index: {}, may-alias: {3,4}]   ;;  %s1157_s1 = inlined_call_operand.vmem [shape: f32[1,512], index: 1, kind: input, shape index: {}, may-alias: {1,2}]   ;;  %s1158_s2 = inlined_call_operand.vmem [shape: f32[1,512], index: 2, kind: input, shape index: {}, may-alias: {1,2}]   ;;  %s1159_s8 = inlined_call_operand.vmem [shape: bf16[4,256], index: 8, kind: input, shape index: {}]   ;;  %s1160_s9 = inlined_call_operand.vmem [shape: bf16[8,4], index: 9, kind: input, shape index: {}]   ;;  %s1161_s5 = inlined_call_operand.vmem [shape: bf16[9,8,8], index: 5, kind: input, shape index: {}]   ;;  %s1162_s0 = inlined_call_operand.vmem [shape: f32[1,256], index: 0, kind: input, shape index: {}]   ;;  %s1163_s10 = inlined_call_operand.vmem [shape: bf16[8,256], index: 10, kind: output, shape index: {0}]   ;;  %s1164_s11 = inlined_call_operand.vmem [shape: f32[1,8,1], index: 11, kind: output, shape index: {1}]   ;;  %s1165_s12 = inlined_call_operand.vmem [shape: f32[1,8,1], index: 12, kind: output, shape index: {2}]   ;;  %s1166_s13 = inlined_call_operand.vmem [shape: f32[1,8,1], index: 13, kind: output, shape index: {3}]   ;;  %s1167_s14 = inlined_call_operand.vmem [shape: f32[1,8,1], index: 14, kind: output, shape index: {4}]  }
   0x1   :  { %931 = vset.pattern.permute.xlu0 %v935_v0  ;;  %v82_v1 = vld [vmem:[%s1153_s6] sm:$0xff]  ;;  %210 = vmatprep.mubr.bf16.mxu0 %v935_v0  ;;  %v934_v8 = vld [vmem:[%s1155_s4 + $0x8] ss:$0 sps:$4 sm:$0xff]   ;;  %s940_s25 = smov 126   ;;  %s941_s26 = smov 107   ;;  %vm470_vm2 = vcmask 957440  }
   0x2   :  { %121 = vperm.xlu0 %931, %v82_v1   ;;  %514 = vmatprep.mubr.bf16.mxu1 %v935_v0  ;;  %v83_v2 = vld [vmem:[%s1154_s7] sm:$0xff]  ;;  %v1031_v5 = vshrl.u32 %v103_v3, 7  ;;  %v99_v15 = vunpack.c.l.bf16 %v934_v8  ;;  %s942_s27 = smov 118   ;;  %s943_s28 = smov 106   ;;  %vm238_vm3 = vcmask 1043456   ;;  %vm234_vm4 = vcmask 64512  }
   0x3   :  { %v84_v4 = vld [vmem:[%s1156_s3] sm:$0xff]  ;;  %v875_v50 = vld [vmem:[%s1161_s5 + $0x10] sm:$0xf]  ;;  %vm231_vm5 = vcmask 1039360   ;;  %vm533_vm6 = vcmask 949248   ;;  %vm596_vm7 = vcmask 883712  }
   0x4   :  { %v857_v6 = vcombine.low %v84_v4, %v84_v4  ;;  %v858_v7 = vcombine.high %v84_v4, %v84_v4  ;;  %v1037_v9 = vsub.s32 0, %v1031_v5  ;;  %v100_v10 = vld [vmem:[%s1157_s1] sm:$0x3]  ;;  %v860_v11 = vld [vmem:[%s1158_s2 + $0x2] sm:$0x3]  ;;  %v109_v13 = vsub.s32 1, %v1031_v5 }
   0x5   :  { %v861_v21 = vld.sshfl [vmem:[%s1159_s8] sm:$0x33 pattern:$0x76325410]  ;;  %s936_s8 = smov 117   ;;  %vm344_vm8 = vcmask 1031168  }
   0x6   :  { %129 = vperm.xlu0 %931, %v83_v2   ;;  %v97_v12 = vunpack.c.l.bf16 %v857_v6  ;;  %v98_v14 = vunpack.c.l.bf16 %v858_v7  ;;  %v106_v17 = vrot.slane %v100_v10, %v1037_v9  ;;  %v117_v18 = vrot.slane %v860_v11, %v1037_v9  ;;  %v156_v36 = vld [vmem:[%s1160_s9] sm:$0xf]  ;;  %s939_s9 = smov 108   ;;  %v864_v58 = vld [vmem:[%s1161_s5 + $0x4] sm:$0xf] }
   0x7   :  { %v110_v20 = vrot.slane %v100_v10, %v109_v13  ;;  %v166_v24 = vcombine.high %v861_v21, %v861_v21  ;;  %v173_v31 = vsel %vm171_vm0, %v861_v21, 0  ;;  %v878_v2 = vld [vmem:[%s1161_s5 + $0x14] sm:$0xf]  ;;  %vm659_vm9 = vcmask 875520  }
   0x8   :  { %v141_v26 = vrot.slane %v106_v17, %v1037_v9  ;;  %v149_v27 = vrot.slane %v117_v18, %v1037_v9  ;;  %vm407_vm10 = vcmask 965632   ;;  %vm722_vm11 = vcmask 867328  }
   0x9   :  { %862 = vmatprep.subr.msk.bf16.mxu0 %vm171_vm0, %v166_v24  ;;  %v145_v35 = vrot.slane %v110_v20, %v1037_v9  ;;  %vm803_vm12 = vcmask 7168  }
   0xa   :  { %179 = vmatpush1.bf16.msra.mxu0 %v173_v31 }
   0xd   :  { %863 = vmatmul.mubr.msk.bf16.vlgmr.msra.gmra.mrb[0].mxu0 %vm167_vm1, %v156_v36 }
   0xe   :  { %277 = vmatprep.mubr.bf16.mxu0 %v935_v0 }
  0x81   :  { %v122_v16 = vpop.permute.xlu0 %121 }
  0x82   :  { %v124_v19 = vsub.f32 %v97_v12, %v122_v16  ;;  %v125_v22 = vsub.f32 %v98_v14, %v122_v16  ;;  %v126_v23 = vsub.f32 %v99_v15, %v122_v16  ;;  %v219_v12 = vld [vmem:[%s1161_s5] sm:$0xf] }
  0x85   :  { %v130_v25 = vpop.permute.xlu0 %129 }
  0x86   :  { %v132_v28 = vmul.f32 %v130_v25, %v124_v19  ;;  %v133_v29 = vmul.f32 %v130_v25, %v125_v22  ;;  %v134_v30 = vmul.f32 %v130_v25, %v126_v23  ;;  %v881_v19 = vld [vmem:[%s1161_s5 + $0x18] sm:$0xf] }
  0x88   :  { %v135_v32 = vmax.f32 %v132_v28, 0.0  ;;  %v136_v33 = vmax.f32 %v133_v29, 0.0  ;;  %v137_v34 = vmax.f32 %v134_v30, 0.0 }
  0x8a   :  { %v150_v37 = vmul.f32 %v141_v26, %v135_v32  ;;  %v152_v38 = vmul.f32 %v149_v27, %v137_v34  ;;  %v151_v39 = vmul.f32 %v145_v35, %v136_v33  ;;  %v869_v26 = vld [vmem:[%s1161_s5 + $0x8] sm:$0xf]  ;;  %v884_v32 = vld [vmem:[%s1161_s5 + $0x1c] sm:$0xf] }
  0x8c   :  { %v1060_v40 = vpack.c.bf16 %v150_v37, %v150_v37  ;;  %v155_v41 = vpack.c.bf16 %v152_v38, %v152_v38  ;;  %v154_v42 = vpack.c.bf16 %v151_v39, %v151_v39  ;;  %v872_v39 = vld [vmem:[%s1161_s5 + $0xc] sm:$0xf] }
  0x8e   :  { %468 = vrot.lane.b32.xlu0 %v155_v41, %s936_s8  ;;  %464 = vrot.lane.b32.xlu1 %v1060_v40, %s936_s8  ;;  %v290_v1 = vsel %vm238_vm3, %v1060_v40, 0 }
  0x92   :  { %227 = vrot.lane.b32.xlu0 %v154_v42, %s937_s23  ;;  %466 = vrot.lane.b32.xlu1 %v154_v42, %s936_s8 }
  0x96   :  { %527 = vrot.lane.b32.xlu0 %v1060_v40, %s938_s24  ;;  %225 = vrot.lane.b32.xlu1 %v1060_v40, %s937_s23 }
  0x9a   :  { %531 = vrot.lane.b32.xlu0 %v155_v41, %s938_s24  ;;  %229 = vrot.lane.b32.xlu1 %v155_v41, %s937_s23 }
  0x9e   :  { %592 = vrot.lane.b32.xlu0 %v154_v42, %s939_s9  ;;  %529 = vrot.lane.b32.xlu1 %v154_v42, %s938_s24 }
  0xa2   :  { %338 = vrot.lane.b32.xlu0 %v1060_v40, %s940_s25  ;;  %590 = vrot.lane.b32.xlu1 %v1060_v40, %s939_s9 }
  0xa6   :  { %342 = vrot.lane.b32.xlu0 %v155_v41, %s940_s25  ;;  %594 = vrot.lane.b32.xlu1 %v155_v41, %s939_s9 }
  0xaa   :  { %655 = vrot.lane.b32.xlu0 %v154_v42, %s941_s26  ;;  %340 = vrot.lane.b32.xlu1 %v154_v42, %s940_s25 }
  0xae   :  { %401 = vrot.lane.b32.xlu0 %v1060_v40, %s942_s27  ;;  %653 = vrot.lane.b32.xlu1 %v1060_v40, %s941_s26 }
  0xb2   :  { %405 = vrot.lane.b32.xlu0 %v155_v41, %s942_s27  ;;  %657 = vrot.lane.b32.xlu1 %v155_v41, %s941_s26 }
  0xb6   :  { %718 = vrot.lane.b32.xlu0 %v154_v42, %s943_s28  ;;  %403 = vrot.lane.b32.xlu1 %v154_v42, %s942_s27 }
  0xba   :  { %716 = vrot.lane.b32.xlu1 %v1060_v40, %s943_s28  ;;  %v887_v40 = vld [vmem:[%s1161_s5 + $0x20] sm:$0xf] }
  0xbe   :  { %720 = vrot.lane.b32.xlu1 %v155_v41, %s943_s28 }
 0x100   :  { %v469_v43 = vpop.permute.xlu0 %468  ;;  %v465_v44 = vpop.permute.xlu1 %464 }
 0x104   :  { %v228_v45 = vpop.permute.xlu0 %227  ;;  %v467_v46 = vpop.permute.xlu1 %466 }
 0x105   :  { %v472_v47 = vsel %vm470_vm2, %v467_v46, %v469_v43  ;;  %v471_v48 = vsel %vm470_vm2, %v465_v44, %v467_v46  ;;  %v212_v43 = vpop.f32.mrb[0].mxu0 }
 0x106   :  { %876 = vmatprep.subr.msk.bf16.mxu1 %vm238_vm3, %v472_v47  ;;  %v477_v49 = vsel %vm238_vm3, %v471_v48, 0  ;;  %v214_v44 = vpop.f32.mrb[1].mxu0  ;;  %v819_v47 = vmul.f32 %v212_v43, %v212_v43 }
 0x107   :  { %483 = vmatpush1.bf16.msra.mxu1 %v477_v49  ;;  %v820_v49 = vmul.f32 %v214_v44, %v214_v44 }
 0x108   :  { %v528_v51 = vpop.permute.xlu0 %527  ;;  %v226_v52 = vpop.permute.xlu1 %225 }
 0x109   :  { %v232_v53 = vsel %vm231_vm5, %v226_v52, %v228_v45 }
 0x10a   :  { %877 = vmatmul.mubr.msk.bf16.vlgmr.msra.gmra.mrb[0].mxu1 %vm234_vm4, %v875_v50  ;;  %v240_v57 = vsel %vm238_vm3, %v232_v53, 0 }
 0x10b   :  { %577 = vmatprep.mubr.bf16.mxu1 %v935_v0 }
 0x10c   :  { %v532_v54 = vpop.permute.xlu0 %531  ;;  %v230_v55 = vpop.permute.xlu1 %229 }
 0x10d   :  { %v233_v56 = vsel %vm231_vm5, %v228_v45, %v230_v55  ;;  %v216_v45 = vpop.f32.mrb[2].mxu0 }
 0x10e   :  { %865 = vmatprep.subr.msk.bf16.mxu0 %vm238_vm3, %v233_v56  ;;  %v217_v50 = vpop.f32.mrb[3].mxu0 }
 0x10f   :  { %246 = vmatpush1.bf16.msra.mxu0 %v240_v57 }
 0x110   :  { %v593_v59 = vpop.permute.xlu0 %592  ;;  %867 = vmatprep.subr.msk.bf16.mxu0 %vm238_vm3, %v154_v42  ;;  %v530_v60 = vpop.permute.xlu1 %529 }
 0x111   :  { %v534_v61 = vsel %vm533_vm6, %v528_v51, %v530_v60  ;;  %v535_v62 = vsel %vm533_vm6, %v530_v60, %v532_v54 }
 0x112   :  { %v540_v63 = vsel %vm238_vm3, %v534_v61, 0  ;;  %866 = vmatmul.mubr.msk.bf16.vlgmr.msra.gmra.mrb[4].mxu0 %vm234_vm4, %v864_v58  ;;  %879 = vmatprep.subr.msk.bf16.mxu1 %vm238_vm3, %v535_v62 }
 0x113   :  { %296 = vmatpush1.bf16.msra.mxu0 %v290_v1  ;;  %546 = vmatpush1.bf16.msra.mxu1 %v540_v63 }
 0x114   :  { %v339_v3 = vpop.permute.xlu0 %338  ;;  %v591_v4 = vpop.permute.xlu1 %590  ;;  %327 = vmatprep.mubr.bf16.mxu0 %v935_v0 }
 0x115   :  { %v597_v6 = vsel %vm596_vm7, %v591_v4, %v593_v59 }
 0x116   :  { %880 = vmatmul.mubr.msk.bf16.vlgmr.msra.gmra.mrb[0].mxu1 %vm234_vm4, %v878_v2  ;;  %v603_v11 = vsel %vm238_vm3, %v597_v6, 0 }
 0x117   :  { %640 = vmatprep.mubr.bf16.mxu1 %v935_v0 }
 0x118   :  { %v343_v7 = vpop.permute.xlu0 %342  ;;  %v595_v8 = vpop.permute.xlu1 %594 }
 0x119   :  { %v598_v10 = vsel %vm596_vm7, %v593_v59, %v595_v8 }
 0x11a   :  { %882 = vmatprep.subr.msk.bf16.mxu1 %vm238_vm3, %v598_v10 }
 0x11b   :  { %609 = vmatpush1.bf16.msra.mxu1 %v603_v11 }
 0x11c   :  { %v656_v14 = vpop.permute.xlu0 %655  ;;  %v341_v15 = vpop.permute.xlu1 %340 }
 0x11d   :  { %v345_v16 = vsel %vm344_vm8, %v339_v3, %v341_v15  ;;  %v346_v17 = vsel %vm344_vm8, %v341_v15, %v343_v7 }
 0x11e   :  { %v351_v18 = vsel %vm238_vm3, %v345_v16, 0  ;;  %868 = vmatmul.mubr.msk.bf16.vlgmr.msra.gmra.mrb[4].mxu0 %vm234_vm4, %v219_v12  ;;  %870 = vmatprep.subr.msk.bf16.mxu0 %vm238_vm3, %v346_v17 }
 0x11f   :  { %357 = vmatpush1.bf16.msra.mxu0 %v351_v18  ;;  %388 = vmatprep.mubr.bf16.mxu0 %v935_v0 }
 0x120   :  { %v654_v20 = vpop.permute.xlu1 %653  ;;  %v402_v21 = vpop.permute.xlu0 %401 }
 0x121   :  { %v660_v22 = vsel %vm659_vm9, %v654_v20, %v656_v14 }
 0x122   :  { %883 = vmatmul.mubr.msk.bf16.vlgmr.msra.gmra.mrb[0].mxu1 %vm234_vm4, %v881_v19  ;;  %v666_v25 = vsel %vm238_vm3, %v660_v22, 0 }
 0x123   :  { %703 = vmatprep.mubr.bf16.mxu1 %v935_v0 }
 0x124   :  { %v658_v23 = vpop.permute.xlu1 %657  ;;  %v406_v27 = vpop.permute.xlu0 %405 }
 0x125   :  { %v661_v24 = vsel %vm659_vm9, %v656_v14, %v658_v23 }
 0x126   :  { %885 = vmatprep.subr.msk.bf16.mxu1 %vm238_vm3, %v661_v24 }
 0x127   :  { %672 = vmatpush1.bf16.msra.mxu1 %v666_v25 }
 0x128   :  { %v404_v28 = vpop.permute.xlu1 %403  ;;  %v719_v34 = vpop.permute.xlu0 %718 }
 0x129   :  { %v408_v29 = vsel %vm407_vm10, %v402_v21, %v404_v28  ;;  %v409_v30 = vsel %vm407_vm10, %v404_v28, %v406_v27 }
 0x12a   :  { %v414_v31 = vsel %vm238_vm3, %v408_v29, 0  ;;  %871 = vmatmul.mubr.msk.bf16.vlgmr.msra.gmra.mrb[4].mxu0 %vm234_vm4, %v869_v26  ;;  %873 = vmatprep.subr.msk.bf16.mxu0 %vm238_vm3, %v409_v30 }
 0x12b   :  { %420 = vmatpush1.bf16.msra.mxu0 %v414_v31  ;;  %451 = vmatprep.mubr.bf16.mxu0 %v935_v0 }
 0x12c   :  { %v717_v33 = vpop.permute.xlu1 %716 }
 0x12d   :  { %v723_v35 = vsel %vm722_vm11, %v717_v33, %v719_v34 }
 0x12e   :  { %886 = vmatmul.mubr.msk.bf16.vlgmr.msra.gmra.mrb[0].mxu1 %vm234_vm4, %v884_v32  ;;  %v729_v38 = vsel %vm238_vm3, %v723_v35, 0 }
 0x12f   :  { %766 = vmatprep.mubr.bf16.mxu1 %v935_v0  ;;  %v786_v0 = vld [vmem:[%s1162_s0] sm:$0x3] }
 0x130   :  { %v721_v36 = vpop.permute.xlu1 %720  ;;  %v791_v41 = vrot.slane %v786_v0, %v1037_v9  ;;  %v795_v42 = vrot.slane %v786_v0, %v109_v13 }
 0x131   :  { %v724_v37 = vsel %vm722_vm11, %v719_v34, %v721_v36 }
 0x132   :  { %888 = vmatprep.subr.msk.bf16.mxu1 %vm238_vm3, %v724_v37  ;;  %v813_v46 = vmul.f32 %v791_v41, %v212_v43  ;;  %v814_v48 = vmul.f32 %v795_v42, %v214_v44  ;;  %v821_v52 = vmul.f32 %v819_v47, %v791_v41  ;;  %v822_v53 = vmul.f32 %v820_v49, %v795_v42 }
 0x133   :  { %735 = vmatpush1.bf16.msra.mxu1 %v729_v38 }
 0x134   :  { %v815_v51 = vadd.f32 %v814_v48, %v813_v46  ;;  %v823_v54 = vadd.f32 %v822_v53, %v821_v52 }
 0x136   :  { %874 = vmatmul.mubr.msk.bf16.vlgmr.msra.gmra.mrb[4].mxu0 %vm234_vm4, %v872_v39 }
 0x13a   :  { %889 = vmatmul.mubr.msk.bf16.vlgmr.msra.gmra.mrb[0].mxu1 %vm234_vm4, %v887_v40 }
 0x209   :  { %v453_v55 = vpop.f32.mrb[4].mxu0 }
 0x20a   :  { %v455_v56 = vpop.f32.mrb[5].mxu0 }
 0x20b   :  { %v457_v57 = vpop.f32.mrb[6].mxu0 }
 0x20c   :  { %v458_v58 = vpop.f32.mrb[7].mxu0 }
 0x20d   :  { %v768_v9 = vpop.f32.mrb[0].mxu1 }
 0x20e   :  { %v892_v59 = vadd.f32 %v768_v9, %v453_v55  ;;  %v770_v5 = vpop.f32.mrb[1].mxu1 }
 0x20f   :  { %v893_v13 = vadd.f32 %v770_v5, %v455_v56  ;;  %v772_v60 = vpop.f32.mrb[2].mxu1 }
 0x210   :  { %v805_v61 = vmul.f32 %v892_v59, %v892_v59  ;;  %v773_v62 = vpop.f32.mrb[3].mxu1  ;;  %v798_v63 = vmul.f32 %v892_v59, %v791_v41 }
 0x211   :  { %v891_v1 = vpack.c.bf16 %v893_v13, %v892_v59  ;;  %v806_v2 = vmul.f32 %v893_v13, %v893_v13  ;;  %v799_v3 = vmul.f32 %v893_v13, %v795_v42 }
 0x212   :  { %v807_v4 = vmul.f32 %v805_v61, %v791_v41 }
 0x213   :  { %785 = vst [vmem:[%s1163_s10] sm:$0xff] %v891_v1  ;;  %v800_v6 = vadd.f32 %v799_v3, %v798_v63  ;;  %v808_v7 = vmul.f32 %v806_v2, %v795_v42 }
 0x215   :  { %801 = vadd.xlane.f32.xlu0 %v800_v6  ;;  %v809_v8 = vadd.f32 %v808_v7, %v807_v4 }
 0x217   :  { %810 = vadd.xlane.f32.xlu1 %v809_v8 }
 0x219   :  { %816 = vadd.xlane.f32.xlu0 %v815_v51 }
 0x21d   :  { %824 = vadd.xlane.f32.xlu0 %v823_v54 }
 0x2a2   :  { %v802_v10 = vpop.xlane.xlu0 %801 }
 0x2a3   :  { %804 = vst.msk [vmem:[%s1164_s11] sm:$0xff] %vm803_vm12, %v802_v10 }
 0x2a4   :  { %v811_v11 = vpop.xlane.xlu1 %810 }
 0x2a5   :  { %812 = vst.msk [vmem:[%s1165_s12] sm:$0xff] %vm803_vm12, %v811_v11 }
 0x2a6   :  { %v817_v12 = vpop.xlane.xlu0 %816 }
 0x2a7   :  { %818 = vst.msk [vmem:[%s1166_s13] sm:$0xff] %vm803_vm12, %v817_v12 }
 0x2aa   :  { %v825_v14 = vpop.xlane.xlu0 %824 }
 0x2ab   :  { %826 = vst.msk [vmem:[%s1167_s14] sm:$0xff] %vm803_vm12, %v825_v14 }

</bundles_post_ra>
